<compile_context>
chip_gen: v5e
topology: v5e:2x2
jax: 0.10.0
libtpu: 0.0.40
codegen_flags: <defaults>
</compile_context>

<pallas_src>
import functools

import jax
import jax.numpy as jnp
from jax.experimental import pallas as pl
from jax.experimental.pallas import tpu as pltpu

EPS = 1e-6  # GeM eps (matches the nn.Module default)


# ----------------------------------------------------------------------------
# Kernel: one (batch n, C-tile c, HW-tile k) grid step of GeM pooling.
#   p_ref   : (1,) f32 in SMEM            learned GeM exponent (assumed > 0)
#   x_ref   : (1, c_tile, t_hw) tile      NCHW features viewed as (N, C, HW)
#   o_ref   : (1, c_tile, 1)              pooled output (resident over k)
#   acc_ref : (c_tile, 128) f32 scratch   lane-chunked running sum of x^p
# ----------------------------------------------------------------------------
def _gem_kernel(p_ref, x_ref, o_ref, acc_ref, *, hw: int, t_hw: int):
    k = pl.program_id(2)
    nk = pl.num_programs(2)

    @pl.when(k == 0)
    def _init():
        acc_ref[...] = jnp.zeros_like(acc_ref)

    p = p_ref[0]                                  # scalar exponent
    x = x_ref[0].astype(jnp.float32)              # (c_tile, t_hw)
    x = jnp.maximum(x, EPS)                       # clamp(min=eps) -> x > 0
    xp = jnp.exp(p * jnp.log(x))                  # x ** p  (EUP)

    # Mask padded lanes of the (statically known) partial last HW tile only.
    rem_hw = hw % t_hw
    if rem_hw != 0:
        lane = jax.lax.broadcasted_iota(jnp.int32, (1, t_hw), 1)
        keep = jnp.logical_or(k != nk - 1, lane < rem_hw)     # (1, t_hw)
        xp = jnp.where(keep, xp, 0.0)

    # Lane-chunked accumulation: pure VPU adds, no per-step cross-lane reduce.
    n_full = t_hw // 128
    rem128 = t_hw % 128
    if n_full > 0:
        part = xp[:, :128]
        for j in range(1, n_full):
            part = part + xp[:, j * 128:(j + 1) * 128]
        acc_ref[...] += part
    if rem128 > 0:
        acc_ref[:, :rem128] += xp[:, n_full * 128:]

    @pl.when(k == nk - 1)
    def _finalize():
        total = jnp.sum(acc_ref[...], axis=1, keepdims=True)   # (c_tile, 1)
        pooled = total * (1.0 / hw)                             # mean over H*W
        y = jnp.exp((1.0 / p) * jnp.log(pooled))                # pooled ** (1/p)
        o_ref[0] = y.astype(o_ref.dtype)


# ----------------------------------------------------------------------------
# Wrapper: NCHW consumed natively (free reshape), tiled pallas_call.
# ----------------------------------------------------------------------------
def gem(x_nchw, p, *, c_tile_max: int = 256, t_hw_max: int = 2048):
    """GeM: avg_pool2d(clamp(x, eps)**p, (H, W)) ** (1/p).  Returns (N, C, 1, 1)."""
    N, C, H, W = x_nchw.shape
    HW = H * W

    # Free view: no transpose, no pad, no extra HBM traffic.
    x = x_nchw.reshape(N, C, HW)

    itemsize = jnp.dtype(x_nchw.dtype).itemsize
    sub = {4: 8, 2: 16, 1: 32}.get(itemsize, 8)      # dtype sublane quantum

    # Channel tile on the sublane axis: full C when small (always legal),
    # otherwise a multiple of the dtype sublane quantum.  Partial last C tile
    # is fine: OOB output rows are dropped, OOB input rows never touch valid
    # accumulator rows (elementwise only).
    if C <= c_tile_max:
        c_tile = C
    else:
        c_tile = max(sub, (c_tile_max // sub) * sub)
    n_c = pl.cdiv(C, c_tile)

    # HW tile on the lane axis: full HW when small, else lane-dense multiple
    # of 128 (partial last tile is masked in-kernel; no HBM-side padding).
    t_hw = HW if HW <= t_hw_max else (t_hw_max // 128) * 128
    n_hw = pl.cdiv(HW, t_hw)

    kernel = functools.partial(_gem_kernel, hw=HW, t_hw=t_hw)

    cost = pl.CostEstimate(
        flops=5 * N * C * HW,
        transcendentals=2 * N * C * HW + 2 * N * C,
        bytes_accessed=N * C * HW * itemsize + N * C * itemsize,
    )

    # TODO(synk): p is a learned parameter assumed strictly positive (matches
    #             the PyTorch module); no traced-value assert is emitted.
    out = pl.pallas_call(
        kernel,
        out_shape=jax.ShapeDtypeStruct((N, C, 1), x_nchw.dtype),
        grid_spec=pltpu.PrefetchScalarGridSpec(
            num_scalar_prefetch=0,
            grid=(N, n_c, n_hw),                      # reduction (HW) axis last
            in_specs=[
                pl.BlockSpec(memory_space=pltpu.MemorySpace.SMEM),          # p
                pl.BlockSpec((1, c_tile, t_hw), lambda n, c, k: (n, c, k)),  # x
            ],
            out_specs=pl.BlockSpec((1, c_tile, 1), lambda n, c, k: (n, c, 0)),
            scratch_shapes=[pltpu.VMEM((c_tile, 128), jnp.float32)],
        ),
        compiler_params=pltpu.CompilerParams(
            dimension_semantics=("parallel", "parallel", "arbitrary"),
            vmem_limit_bytes=32 * 1024 * 1024,
        ),
        cost_estimate=cost,
    )(p.astype(jnp.float32), x)

    # restore PyTorch avg_pool2d output shape (N, C, 1, 1)
    return out.reshape(N, C, 1, 1)


# TODO(synk): the surrounding EfficientNet backbone / FC head are not part of
#             this module (GeM only); they are intentionally not modeled here.

if __name__ == "__main__":
    key = jax.random.PRNGKey(0)
    k_x, _ = jax.random.split(key)

    N, C, H, W = 2, 4, 16, 16
    x = jax.random.normal(k_x, (N, C, H, W), jnp.float32)
    p = jnp.ones((1,), jnp.float32) * 3.0          # nn.Parameter(torch.ones(1)*3)

    y = jax.block_until_ready(gem(x, p))

    # pure-JAX reference with identical semantics to the PyTorch module
    xc = jnp.maximum(x, EPS)
    ref = jnp.mean(xc ** p[0], axis=(2, 3), keepdims=True) ** (1.0 / p[0])

    assert y.shape == (N, C, 1, 1), y.shape
    assert jnp.allclose(y, ref, rtol=1e-3, atol=1e-5), float(jnp.max(jnp.abs(y - ref)))
    print("KERNEL_OK")
</pallas_src>

<mosaic_0001>
module attributes {stable_mosaic.version = 11 : i64} {
  func.func @_gem_kernel(%arg0: i32, %arg1: i32, %arg2: i32, %arg3: memref<1xf32, #tpu.memory_space<smem>>, %arg4: memref<1x4x256xf32, #tpu.memory_space<vmem>>, %arg5: memref<1x4x1xf32, #tpu.memory_space<vmem>>, %arg6: memref<4x128xf32, #tpu.memory_space<vmem>>) attributes {dimension_semantics = [#tpu.dimension_semantics<parallel>, #tpu.dimension_semantics<parallel>, #tpu.dimension_semantics<arbitrary>], iteration_bounds = array<i64: 2, 1, 1>, scalar_prefetch = 0 : i64, scratch_operands = 1 : i64, tpu.core_type = #tpu.core_type<tc>, window_params = [{transform_indices = @transform_0, window_bounds = array<i64: 1>}, {transform_indices = @transform_1, window_bounds = array<i64: 1, 4, 256>}, {transform_indices = @transform_2, window_bounds = array<i64: 1, 4, 1>}]} {
    %c0_i32 = arith.constant 0 : i32
    %0 = arith.cmpi eq, %arg2, %c0_i32 : i32
    %1 = arith.extui %0 : i1 to i32
    %c0_i32_0 = arith.constant 0 : i32
    %2 = arith.cmpi ne, %1, %c0_i32_0 : i32
    scf.if %2 {
      %cst_10 = arith.constant 0.000000e+00 : f32
      %21 = vector.broadcast %cst_10 : f32 to vector<4x128xf32>
      %c0_11 = arith.constant 0 : index
      %c0_12 = arith.constant 0 : index
      %22 = vector.load %arg6[%c0_11, %c0_12] : memref<4x128xf32, #tpu.memory_space<vmem>>, vector<4x128xf32>
      tpu.vector_store %arg6[%c0_11, %c0_12], %21 {strides = array<i32>} : memref<4x128xf32, #tpu.memory_space<vmem>>, vector<4x128xf32>,
    } else {
    }
    %c0 = arith.constant 0 : index
    %3 = memref.load %arg3[%c0] : memref<1xf32, #tpu.memory_space<smem>>
    %c0_1 = arith.constant 0 : index
    %c0_2 = arith.constant 0 : index
    %c0_3 = arith.constant 0 : index
    %4 = vector.load %arg4[%c0_1, %c0_2, %c0_3] : memref<1x4x256xf32, #tpu.memory_space<vmem>>, vector<1x4x256xf32>
    %5 = vector.shape_cast %4 : vector<1x4x256xf32> to vector<4x256xf32>
    %cst = arith.constant 9.99999997E-7 : f32
    %6 = vector.broadcast %cst : f32 to vector<4x256xf32>
    %7 = arith.maximumf %5, %6 : vector<4x256xf32>
    %8 = math.log %7 : vector<4x256xf32>
    %9 = vector.broadcast %3 : f32 to vector<4x256xf32>
    %10 = arith.mulf %9, %8 : vector<4x256xf32>
    %11 = math.exp %10 : vector<4x256xf32>
    %12 = vector.extract_strided_slice %11 {offsets = [0, 0], sizes = [4, 128], strides = [1, 1]} : vector<4x256xf32> to vector<4x128xf32>
    %13 = vector.extract_strided_slice %11 {offsets = [0, 128], sizes = [4, 128], strides = [1, 1]} : vector<4x256xf32> to vector<4x128xf32>
    %14 = arith.addf %12, %13 : vector<4x128xf32>
    %c0_4 = arith.constant 0 : index
    %c0_5 = arith.constant 0 : index
    %15 = vector.load %arg6[%c0_4, %c0_5] : memref<4x128xf32, #tpu.memory_space<vmem>>, vector<4x128xf32>
    %16 = arith.addf %15, %14 : vector<4x128xf32>
    %c0_6 = arith.constant 0 : index
    %c0_7 = arith.constant 0 : index
    %17 = vector.load %arg6[%c0_6, %c0_7] : memref<4x128xf32, #tpu.memory_space<vmem>>, vector<4x128xf32>
    tpu.vector_store %arg6[%c0_6, %c0_7], %16 {strides = array<i32>} : memref<4x128xf32, #tpu.memory_space<vmem>>, vector<4x128xf32>,
    %c0_i32_8 = arith.constant 0 : i32
    %18 = arith.cmpi eq, %arg2, %c0_i32_8 : i32
    %19 = arith.extui %18 : i1 to i32
    %c0_i32_9 = arith.constant 0 : i32
    %20 = arith.cmpi ne, %19, %c0_i32_9 : i32
    scf.if %20 {
      %c0_10 = arith.constant 0 : index
      %c0_11 = arith.constant 0 : index
      %21 = vector.load %arg6[%c0_10, %c0_11] : memref<4x128xf32, #tpu.memory_space<vmem>>, vector<4x128xf32>
      %cst_12 = arith.constant dense<0.000000e+00> : vector<4xf32>
      %22 = vector.multi_reduction <add>, %21, %cst_12 [1] : vector<4x128xf32> to vector<4xf32>
      %23 = vector.shape_cast %22 : vector<4xf32> to vector<4x1xf32>
      %cst_13 = arith.constant 3.906250e-03 : f32
      %24 = vector.broadcast %cst_13 : f32 to vector<4x1xf32>
      %25 = arith.mulf %23, %24 : vector<4x1xf32>
      %cst_14 = arith.constant 1.000000e+00 : f32
      %26 = arith.divf %cst_14, %3 : f32
      %27 = math.log %25 : vector<4x1xf32>
      %28 = vector.broadcast %26 : f32 to vector<4x1xf32>
      %29 = arith.mulf %28, %27 : vector<4x1xf32>
      %30 = math.exp %29 : vector<4x1xf32>
      %c0_15 = arith.constant 0 : index
      %c0_16 = arith.constant 0 : index
      %c0_17 = arith.constant 0 : index
      %31 = vector.load %arg5[%c0_15, %c0_16, %c0_17] : memref<1x4x1xf32, #tpu.memory_space<vmem>>, vector<1x4x1xf32>
      %32 = vector.shape_cast %31 : vector<1x4x1xf32> to vector<4x1xf32>
      %33 = vector.shape_cast %30 : vector<4x1xf32> to vector<1x4x1xf32>
      tpu.vector_store %arg5[%c0_15, %c0_16, %c0_17], %33 {strides = array<i32>} : memref<1x4x1xf32, #tpu.memory_space<vmem>>, vector<1x4x1xf32>,
    } else {
    }
    return
  }
  func.func @transform_0(%arg0: i32, %arg1: i32, %arg2: i32) -> i32 {
    %c0_i32 = arith.constant 0 : i32
    %c0_i32_0 = arith.constant 0 : i32
    return %c0_i32 : i32
  }
  func.func @transform_1(%arg0: i32, %arg1: i32, %arg2: i32) -> (i32, i32, i32) {
    %c0_i32 = arith.constant 0 : i32
    return %arg0, %arg1, %arg2 : i32, i32, i32
  }
  func.func @transform_2(%arg0: i32, %arg1: i32, %arg2: i32) -> (i32, i32, i32) {
    %c0_i32 = arith.constant 0 : i32
    %c0_i32_0 = arith.constant 0 : i32
    return %arg0, %arg1, %c0_i32 : i32, i32, i32
  }
}

</mosaic_0001>

<bundles_post_ra>
// kernel: tpu_custom_call.1
= control target key start
LH: loop header
LB: loop body
LE: loop exit
PB: predicated region body
PF: predicated region fallthrough
CT: control target
= control target key end

     0   :  { %s614_s0 = inlined_call_operand.<no memory space> [shape: f32[1], index: 0, kind: input, shape index: {}]   ;;  %s615_s1 = inlined_call_operand.hbm [shape: f32[2,4,256], index: 1, kind: input, shape index: {}]   ;;  %s616_s2 = inlined_call_operand.vmem [shape: f32[2,4,1], index: 2, kind: output, shape index: {}]  }
   0x1   :  { %7 = sst [smem:[#allocation3]] %s614_s0 }
   0x2   :  { %8 = vsyncpa [#allocation5], 0 }
   0x3   :  { %10 = vsyncpa [#allocation5 + $0x1], 0  ;;  %s526_s11 = smov 0   ;;  %s528_s12 = smov 0  }
   0x4   :  { %s530_s13 = smov 0   ;;  %s532_s14 = smov 0  }
   0x5   :  { %s534_s15 = smov 0   ;;  %s536_s16 = smov 0  }
   0x6 LB: > { %s344_s0 = sadd.s32 4294967295, %s505_s16   ;;  %s35_s17 = sadd.s32 1, %s501_s15  ;;  %s505_s16 = sphi %s536_s16, %s16_s16   ;;  %s501_s15 = sphi %s534_s15, %s623_s15   ;;  %s497_s14 = sphi %s532_s14, %s622_s14   ;;  %s493_s13 = sphi %s530_s13, %s621_s13   ;;  %s489_s12 = sphi %s528_s12, %s620_s12   ;;  %s485_s11 = sphi %s526_s11, %s619_s11  }
   0x7   : > { %p37_p0 = scmp.ge.s32.totalorder %s35_s17, 2  ;;  %s67_s18 = sadd.s32 1, %s493_s13 }
   0x8   : > { %p74_p1 = scmp.ne.s32.totalorder %s493_s13, %s489_s12  ;;  %p75_p2 = scmp.eq.s32.totalorder %s505_s16, 0 }
   0x9   : > { %s625_s17 = smov (%p37_p0, %s35_s17), 0  ;;  %p80_p4 = scmp.ne.s32.totalorder %s489_s12, %s485_s11 }
   0xa   : > { %p562_p3 = por %p75_p2, %p74_p1  ;;  %s60_s20 = ssub.s32 %s501_s15, %s625_s17 }
   0xb   : > { %p81_p5 = scmp.eq.s32.totalorder %s344_s0, 0  ;;  %p65_p6 = scmp.eq.s32.totalorder %s60_s20, 0 }
   0xc   : > { %p365_p8 = scmp.lt.s32.totalorder %s505_s16, 2  ;;  %s135_s23 = sand.u32 1, %s493_s13  }
   0xd   : > { %p569_p7 = por %p81_p5, %p80_p4  ;;  %s356_s24 = sshll.u32 %s501_s15, 3 }
   0xe   : > { %s575_s22 = scalar_select %p65_p6, %s493_s13, %s67_s18  }
   0xf   : > { %s348_s25 = sshll.u32 %s135_s23, 3  ;;  %s148_s28 = scalar_lea.hbm %s615_s1, %s356_s24 }
  0x10   : > { %s150_s29 = sshll.u32 %s148_s28, 4  ;;  %s139_s30 = scalar_lea.vmem [#allocation4], %s348_s25  ;;  %s151_s29 = int_to_ptr.hbm [resolvable:$true] %s150_s29 }
  0x11   : > { %s152_s3 = sshll.u32 %s139_s30, 4  ;;  %p362_p9 = pnand %p365_p8, %p562_p3  ;;  %s153_s3 = int_to_ptr.vmem [resolvable:$true] %s152_s3 }
  0x12   : > { %p351_p10 = scmp.ge.s32.totalorder %s505_s16, 1  ;;  %p157_p11 = scmp.lt.s32.totalorder %s505_s16, 3 }
  0x13   : > { %s136_s4 = scalar_lea.sflag [#allocation5], %s135_s23 }
  0x14   : > { %364 = dma.hbm_to_vmem [thread:$0]  (!%p362_p9), %s151_s29, 128, %s153_s3, %s136_s4  }
  0x15   : > { %p158_p12 = pnand %p351_p10, %p157_p11 }
  0x16   : > { %s163_s5 = sand.u32 (!%p158_p12), 1, %s489_s12  }
  0x17   : > { %161 = sbr.rel (%p158_p12) target bundleno = 211 (0xd3), region = 28  ;;  %s352_s6 = sshll.u32 (!%p158_p12), %s163_s5, 3 }
  0x18   : > { %s164_s7 = scalar_lea.sflag (!%p158_p12), [#allocation5], %s163_s5  ;;  %s167_s8 = scalar_lea.vmem (!%p158_p12), [#allocation4], %s352_s6 }
  0x1c   : > { %480 = dma.done.wait (%p569_p7), %s164_s7, 128  }
  0x1d   : > { %482 = vsyncadd (%p569_p7), %s164_s7, 4294967168  ;;  %v507_v0 = vmov 0.0   ;;  %s204_s9 = sld [smem:[#allocation3]]  ;;  %v205_v1 = vld [vmem:[%s167_s8] sm:$0xff]  ;;  %vm224_vm4 = vcmask 1043456   ;;  %p192_p13 = scmp.lt.s32.totalorder %s497_s14, 1 }
  0x1e   : > { %203 = vst [vmem:[#allocation2] sm:$0xf] %v507_v0  ;;  %v206_v3 = vmax.f32 %v205_v1, 1e-06  ;;  %vm251_vm5 = vcmask 3072  }
  0x1f   : > { %s627_s14 = smov (!%p192_p13, %s497_s14), 1 }
  0x20   : > { %s353_s11 = sshll.u32 %s627_s14, 2 }
  0x21   : > { %s198_s19 = scalar_lea.vmem %s616_s2, %s353_s11 }
  0x23   : > { %v209_v2 = vstv %s204_s9 }
  0x24   : > { %415 = vrcp.f32 %v209_v2  ;;  %vm235_vm0 = vweird.f32 %v209_v2  ;;  %v241_v7 = vand.u32 2147483648, %v209_v2  ;;  %v239_v10 = vand.u32 2147483647, %v209_v2 }
  0x25   : > { %417 = vlog2.f32 %v206_v3  ;;  %v217_v20 = vld [vmem:[#allocation2] sm:$0xf] }
  0x26   : > { %v242_v13 = vor.u32 1.1754944e-38, %v241_v7  ;;  %vm240_vm3 = vcmp.eq.f32.partialorder %v239_v10, 8.507059e+37 }
  0x2a   : > { %v416_v4 = vpop.eup %415 }
  0x2b   : > { %v231_v5 = vmul.f32 %v416_v4, %v209_v2  ;;  %v418_v6 = vpop.eup %417  ;;  %vm236_vm1 = vweird.f32 %v416_v4 }
  0x2c   : > { %v208_v8 = vmul.f32 0.6931472, %v418_v6  ;;  %vm237_vm2 = vmor %vm235_vm0, %vm236_vm1 }
  0x2d   : > { %v232_v9 = vsub.f32 1.0, %v231_v5 }
  0x2e   : > { %v210_v11 = vmul.f32 %v209_v2, %v208_v8 }
  0x2f   : > { %v233_v12 = vmul.f32 %v416_v4, %v232_v9 }
  0x30   : > { %v211_v14 = vmul.f32 1.442695, %v210_v11 }
  0x31   : > { %v234_v15 = vadd.f32 %v416_v4, %v233_v12 }
  0x32   : > { %419 = vpow2.f32 %v211_v14 }
  0x33   : > { %v238_v16 = vsel %vm237_vm2, %v416_v4, %v234_v15 }
  0x34   : > { %v243_v17 = vsel %vm240_vm3, %v242_v13, %v238_v16 }
  0x35   : > { %357 = vpush %v243_v17 }
  0x38   : > { %v420_v18 = vpop.eup %419 }
  0x39   : > { %v214_v19 = vrot.slane %v420_v18, 4 }
  0x3b   : > { %v216_v21 = vadd.f32 %v420_v18, %v214_v19 }
  0x3d   : > { %v218_v22 = vadd.f32 %v217_v20, %v216_v21 }
  0x3f   : > { %219 = vst [vmem:[#allocation2] sm:$0xf] %v218_v22 }
  0x46   : > { %v223_v23 = vld [vmem:[#allocation2] sm:$0xf] }
  0x47   : > { %v225_v24 = vsel %vm224_vm4, %v223_v23, 0.0 }
  0x48   : > { %226 = vadd.xlane.f32.xlu0 %v225_v24 }
  0x66   : > { %s358_s10 = spop %357 }
  0x67   : > { %v247_v28 = vstv %s358_s10 }
  0xbb   : > { %v227_v25 = vpop.xlane.xlu0 %226 }
  0xbc   : > { %v228_v26 = vmul.f32 0.00390625, %v227_v25 }
  0xbe   : > { %421 = vlog2.f32 %v228_v26 }
  0xc4   : > { %v422_v27 = vpop.eup %421 }
  0xc5   : > { %v246_v29 = vmul.f32 0.6931472, %v422_v27 }
  0xc7   : > { %v248_v30 = vmul.f32 %v247_v28, %v246_v29 }
  0xc9   : > { %v249_v31 = vmul.f32 1.442695, %v248_v30 }
  0xcb   : > { %423 = vpow2.f32 %v249_v31 }
  0xd1   : > { %v424_v32 = vpop.eup %423 }
  0xd2   : > { %252 = vst.msk [vmem:[%s198_s19] sm:$0xf] %vm251_vm5, %v424_v32 }
  0xd3 PF: > { %s16_s16 = sadd.s32 1, %s505_s16   ;;  %s619_s11 = smov %s489_s12 }
  0xd4   : > { %p13_p0 = scmp.ge.s32.totalorder %s16_s16, 4   ;;  %s620_s12 = smov %s493_s13 }
  0xd5   : > { %s621_s13 = smov %s575_s22  ;;  %s622_s14 = smov %s501_s15 }
  0xd6   : > { %s623_s15 = smov %s625_s17  ;;  %15 = sbr.rel (!%p13_p0) target bundleno = 6 (0x6), region = 76 }
  0xdb   :  { %278 = vsyncpa [#allocation5], 1 }
  0xdc   :  { %280 = vsyncpa [#allocation5 + $0x1], 1 }

</bundles_post_ra>
